<compile_context>
chip_gen: v5e
topology: v5e:2x2
jax: 0.10.0
libtpu: 0.0.40
codegen_flags: <defaults>
</compile_context>

<pallas_src>
import functools

import jax
import jax.numpy as jnp
from jax.experimental import pallas as pl
from jax.experimental.pallas import tpu as pltpu

EPS = 1e-5
TAPS = tuple((dh, dw) for dh in (-1, 0, 1) for dw in (-1, 0, 1))


def _round_up(v, m):
    return (v + m - 1) // m * m


def resblock_kernel(Cp, HW, Bt, W, mxu_dtype,
                    x_ref, mask_ref, w1_ref, w2_ref, w3_ref, vec_ref,
                    o_ref, im2col_ref):
    N = Bt * HW
    x = x_ref[...]                       # (Cp, N) f32 lane-dense; also the residual
    masks = mask_ref[...]                # (8, N)  f32 {0,1} precomputed border masks
    vecs = vec_ref[...]                  # (Cp, 9): b1,g1,be1, b2,g2,be2, b3,g3,be3

    def vcol(k):
        return vecs[:, k:k + 1]          # (Cp, 1), broadcasts along lanes

    def inorm(h, gamma, beta):
        # InstanceNorm2d (biased var, eps=1e-5); affine folded into one scale/shift.
        if Bt == 1:
            mean = jnp.mean(h, axis=-1, keepdims=True)
            var = jnp.mean(h * h, axis=-1, keepdims=True) - mean * mean
            scale = gamma * jax.lax.rsqrt(var + EPS)
            return h * scale + (beta - mean * scale)
        # Per-image statistics when several images share the lane axis.
        h3d = h.reshape(Cp, Bt, HW)
        mean = jnp.mean(h3d, axis=-1, keepdims=True)
        var = jnp.mean(h3d * h3d, axis=-1, keepdims=True) - mean * mean
        scale = gamma[:, None, :] * jax.lax.rsqrt(var + EPS)
        shift = beta[:, None, :] - mean * scale
        return (h3d * scale + shift).reshape(Cp, N)

    # ---- conv1 (1x1) -> IN -> ReLU ----------------------------------------
    h1 = jnp.dot(w1_ref[...], x.astype(mxu_dtype),
                 preferred_element_type=jnp.float32) + vcol(0)
    h1 = jnp.maximum(inorm(h1, vcol(1), vcol(2)), 0.0)

    # ---- conv2 (3x3, pad=1) -> IN -> ReLU ----------------------------------
    # Tap (dh,dw) = h1 cyclically rolled by dh*W+dw lanes (XLU), with border and
    # cross-image wrap positions zeroed by the precomputed masks (VPU multiply).
    # The 9 taps are staged into a lane-dense (9*Cp, N) buffer (full-tile stores)
    # and contracted in a single K = 9*Cp MXU matmul.
    m = 0
    for k, (dh, dw) in enumerate(TAPS):
        shift = dh * W + dw
        tap = h1 if shift == 0 else pltpu.roll(h1, (-shift) % N, axis=1)
        if (dh, dw) != (0, 0):
            tap = tap * masks[m:m + 1, :]
            m += 1
        im2col_ref[k * Cp:(k + 1) * Cp, :] = tap.astype(im2col_ref.dtype)

    h2 = (jnp.dot(w2_ref[...], im2col_ref[...],
                  preferred_element_type=jnp.float32) + vcol(3))
    h2 = jnp.maximum(inorm(h2, vcol(4), vcol(5)), 0.0)

    # ---- conv3 (1x1) -> IN -> +residual -> ReLU ----------------------------
    h3 = jnp.dot(w3_ref[...], h2.astype(mxu_dtype),
                 preferred_element_type=jnp.float32) + vcol(6)
    h3 = inorm(h3, vcol(7), vcol(8))
    o_ref[...] = jnp.maximum(h3 + x, 0.0).astype(o_ref.dtype)


def resblock_forward(x, params, *, mxu_dtype=jnp.bfloat16, images_per_step=None):
    """x: (B, C, H, W) float32. params: PyTorch-shaped weights (see __main__)."""
    B, C, H, W = x.shape
    HW = H * W
    (w1, b1, g1, be1, w2, b2, g2, be2, w3, b3, g3, be3) = params

    # Pad channels to the MXU-dtype sublane tile: 8 rows for f32, 16 for bf16, so all
    # per-tap stores and activation loads/stores are full unmasked tiles.
    sub = 8 * (4 // jnp.dtype(mxu_dtype).itemsize)
    Cp = _round_up(C, sub)
    pc = Cp - C

    # >= 2 grid steps whenever possible so both v7x TensorCores get work; each step
    # processes `bt` images concatenated along the lane axis.
    if images_per_step is None:
        images_per_step = B // 2 if (B >= 2 and B % 2 == 0) else 1
    bt = images_per_step
    assert B % bt == 0, "images_per_step must divide the batch"
    steps = B // bt
    N = bt * HW
    assert steps == 1 or N % 128 == 0, "per-step lane width must be a multiple of 128"

    # ---- wrapper-side layout plumbing (pure reshape/transpose/pad, done once by XLA) ---
    xf = jnp.pad(jnp.transpose(x, (1, 0, 2, 3)).reshape(C, B * HW), ((0, pc), (0, 0)))

    w1m = jnp.pad(w1.reshape(C, C), ((0, pc), (0, pc))).astype(mxu_dtype)
    w3m = jnp.pad(w3.reshape(C, C), ((0, pc), (0, pc))).astype(mxu_dtype)
    # (O, I, 3, 3) -> (O, kh, kw, I) -> (O, 9, I) -> pad -> (Cp, 9*Cp); column k*Cp + i
    # multiplies tap k = (dh+1)*3 + (dw+1) of input channel i.
    w2t = jnp.transpose(w2, (0, 2, 3, 1)).reshape(C, 9, C)
    w2cat = jnp.pad(w2t, ((0, pc), (0, 0), (0, pc))).reshape(Cp, 9 * Cp).astype(mxu_dtype)

    # All nine per-channel vectors in one (Cp, 9) block -> one DMA.  Padded rows are zero
    # so padded channels stay exactly zero through conv/IN/ReLU/residual.
    vecs = jnp.stack([jnp.pad(v, (0, pc)) for v in
                      (b1, g1, be1, b2, g2, be2, b3, g3, be3)], axis=1)
    vecs = vecs.astype(jnp.float32)

    # Loop-invariant border masks for the 8 non-center taps, built from pos % HW so any
    # cyclic-roll leakage across image boundaries lands on masked positions.
    pos = jnp.arange(N, dtype=jnp.int32) % HW
    row, col = pos // W, pos % W
    mask_rows = []
    for dh, dw in TAPS:
        if (dh, dw) == (0, 0):
            continue
        ok = jnp.ones((N,), dtype=bool)
        if dh == -1:
            ok &= row >= 1
        elif dh == 1:
            ok &= row <= H - 2
        if dw == -1:
            ok &= col >= 1
        elif dw == 1:
            ok &= col <= W - 2
        mask_rows.append(ok)
    masks = jnp.stack(mask_rows, axis=0).astype(jnp.float32)          # (8, N)

    kern = functools.partial(resblock_kernel, Cp, HW, bt, W, mxu_dtype)

    out = pl.pallas_call(
        kern,
        out_shape=jax.ShapeDtypeStruct((Cp, B * HW), x.dtype),
        grid_spec=pltpu.PrefetchScalarGridSpec(
            num_scalar_prefetch=0,
            grid=(steps,),
            in_specs=[
                pl.BlockSpec((Cp, N), lambda b: (0, b)),        # x: bt images per step
                pl.BlockSpec((8, N), lambda b: (0, 0)),         # precomputed tap masks
                pl.BlockSpec((Cp, Cp), lambda b: (0, 0)),       # w1  (mxu_dtype)
                pl.BlockSpec((Cp, 9 * Cp), lambda b: (0, 0)),   # w2  (im2col layout)
                pl.BlockSpec((Cp, Cp), lambda b: (0, 0)),       # w3  (mxu_dtype)
                pl.BlockSpec((Cp, 9), lambda b: (0, 0)),        # packed bias/gamma/beta
            ],
            out_specs=pl.BlockSpec((Cp, N), lambda b: (0, b)),
            scratch_shapes=[pltpu.VMEM((9 * Cp, N), mxu_dtype)],  # im2col staging
        ),
        compiler_params=pltpu.CompilerParams(
            dimension_semantics=("parallel",),
            vmem_limit_bytes=32 * 1024 * 1024),
    )(xf, masks, w1m, w2cat, w3m, vecs)

    return jnp.transpose(out[:C].reshape(C, B, H, W), (1, 0, 2, 3))


def resblock_reference(x, params):
    """Pure-JAX reference matching PyTorch semantics (for verification)."""
    (w1, b1, g1, be1, w2, b2, g2, be2, w3, b3, g3, be3) = params

    def conv(h, w, b, pad):
        y = jax.lax.conv_general_dilated(
            h, w, window_strides=(1, 1), padding=[(pad, pad), (pad, pad)],
            dimension_numbers=("NCHW", "OIHW", "NCHW"),
            precision=jax.lax.Precision.HIGHEST)
        return y + b.reshape(1, -1, 1, 1)

    def inorm(h, g, be):
        m = h.mean(axis=(2, 3), keepdims=True)
        v = ((h - m) ** 2).mean(axis=(2, 3), keepdims=True)
        return (h - m) / jnp.sqrt(v + EPS) * g.reshape(1, -1, 1, 1) + be.reshape(1, -1, 1, 1)

    h = jax.nn.relu(inorm(conv(x, w1, b1, 0), g1, be1))
    h = jax.nn.relu(inorm(conv(h, w2, b2, 1), g2, be2))
    h = inorm(conv(h, w3, b3, 0), g3, be3)
    return jax.nn.relu(h + x)


if __name__ == "__main__":
    B, C, H, W = 2, 4, 16, 16          # conv_dim = 4, use_bias = True
    key = jax.random.PRNGKey(0)
    ks = jax.random.split(key, 13)
    s = 0.2

    w1 = jax.random.normal(ks[0], (C, C, 1, 1), jnp.float32) * s
    b1 = jax.random.normal(ks[1], (C,), jnp.float32) * s
    w2 = jax.random.normal(ks[2], (C, C, 3, 3), jnp.float32) * s
    b2 = jax.random.normal(ks[3], (C,), jnp.float32) * s
    w3 = jax.random.normal(ks[4], (C, C, 1, 1), jnp.float32) * s
    b3 = jax.random.normal(ks[5], (C,), jnp.float32) * s
    g1 = 1.0 + 0.1 * jax.random.normal(ks[6], (C,), jnp.float32)
    be1 = 0.1 * jax.random.normal(ks[7], (C,), jnp.float32)
    g2 = 1.0 + 0.1 * jax.random.normal(ks[8], (C,), jnp.float32)
    be2 = 0.1 * jax.random.normal(ks[9], (C,), jnp.float32)
    g3 = 1.0 + 0.1 * jax.random.normal(ks[10], (C,), jnp.float32)
    be3 = 0.1 * jax.random.normal(ks[11], (C,), jnp.float32)
    x = jax.random.normal(ks[12], (B, C, H, W), jnp.float32)

    params = (w1, b1, g1, be1, w2, b2, g2, be2, w3, b3, g3, be3)
    ref = resblock_reference(x, params)

    # f32-MXU path: tight structural correctness check.
    out_f32 = jax.block_until_ready(
        resblock_forward(x, params, mxu_dtype=jnp.float32))
    assert out_f32.shape == (B, C, H, W) and out_f32.dtype == jnp.float32
    assert jnp.allclose(out_f32, ref, atol=5e-3, rtol=5e-3), \
        f"f32 path max abs diff {jnp.max(jnp.abs(out_f32 - ref))}"

    # bf16-at-MXU path (perf default): bf16 operands / f32 accumulation, IN, ReLU;
    # tolerance widened accordingly.
    out_bf16 = jax.block_until_ready(resblock_forward(x, params))
    assert out_bf16.shape == (B, C, H, W) and out_bf16.dtype == jnp.float32
    assert jnp.allclose(out_bf16, ref, atol=5e-2, rtol=5e-2), \
        f"bf16 path max abs diff {jnp.max(jnp.abs(out_bf16 - ref))}"

    print("KERNEL_OK")
</pallas_src>

<mosaic_0001>
module attributes {stable_mosaic.version = 11 : i64} {
  func.func @resblock_kernel(%arg0: i32, %arg1: memref<8x256xf32, #tpu.memory_space<vmem>>, %arg2: memref<8x256xf32, #tpu.memory_space<vmem>>, %arg3: memref<8x8xf32, #tpu.memory_space<vmem>>, %arg4: memref<8x72xf32, #tpu.memory_space<vmem>>, %arg5: memref<8x8xf32, #tpu.memory_space<vmem>>, %arg6: memref<8x9xf32, #tpu.memory_space<vmem>>, %arg7: memref<8x256xf32, #tpu.memory_space<vmem>>, %arg8: memref<72x256xf32, #tpu.memory_space<vmem>>) attributes {dimension_semantics = [#tpu.dimension_semantics<parallel>], iteration_bounds = array<i64: 2>, scalar_prefetch = 0 : i64, scratch_operands = 1 : i64, tpu.core_type = #tpu.core_type<tc>, window_params = [{transform_indices = @transform_0, window_bounds = array<i64: 8, 256>}, {pipeline_mode = #tpu.pipeline_mode<synchronous>, transform_indices = @transform_1, window_bounds = array<i64: 8, 256>}, {pipeline_mode = #tpu.pipeline_mode<synchronous>, transform_indices = @transform_2, window_bounds = array<i64: 8, 8>}, {pipeline_mode = #tpu.pipeline_mode<synchronous>, transform_indices = @transform_3, window_bounds = array<i64: 8, 72>}, {pipeline_mode = #tpu.pipeline_mode<synchronous>, transform_indices = @transform_4, window_bounds = array<i64: 8, 8>}, {pipeline_mode = #tpu.pipeline_mode<synchronous>, transform_indices = @transform_5, window_bounds = array<i64: 8, 9>}, {transform_indices = @transform_6, window_bounds = array<i64: 8, 256>}]} {
    %c0 = arith.constant 0 : index
    %c0_0 = arith.constant 0 : index
    %0 = vector.load %arg1[%c0, %c0_0] : memref<8x256xf32, #tpu.memory_space<vmem>>, vector<8x256xf32>
    %c0_1 = arith.constant 0 : index
    %c0_2 = arith.constant 0 : index
    %1 = vector.load %arg2[%c0_1, %c0_2] : memref<8x256xf32, #tpu.memory_space<vmem>>, vector<8x256xf32>
    %c0_3 = arith.constant 0 : index
    %c0_4 = arith.constant 0 : index
    %2 = vector.load %arg6[%c0_3, %c0_4] : memref<8x9xf32, #tpu.memory_space<vmem>>, vector<8x9xf32>
    %c0_5 = arith.constant 0 : index
    %c0_6 = arith.constant 0 : index
    %3 = vector.load %arg3[%c0_5, %c0_6] : memref<8x8xf32, #tpu.memory_space<vmem>>, vector<8x8xf32>
    %cst = arith.constant dense<0.000000e+00> : vector<8x256xf32>
    %4 = tpu.matmul %3, %0, %cst {dimension_numbers = #tpu.dot_dimension_numbers<[1], [0], [0], [1], [0, 0, 1, 1], [], []>} : vector<8x8xf32>, vector<8x256xf32>, vector<8x256xf32> -> vector<8x256xf32>
    %5 = vector.extract_strided_slice %2 {offsets = [0, 0], sizes = [8, 1], strides = [1, 1]} : vector<8x9xf32> to vector<8x1xf32>
    %6 = vector.broadcast %5 : vector<8x1xf32> to vector<8x256xf32>
    %7 = arith.addf %4, %6 : vector<8x256xf32>
    %8 = vector.extract_strided_slice %2 {offsets = [0, 1], sizes = [8, 1], strides = [1, 1]} : vector<8x9xf32> to vector<8x1xf32>
    %9 = vector.extract_strided_slice %2 {offsets = [0, 2], sizes = [8, 1], strides = [1, 1]} : vector<8x9xf32> to vector<8x1xf32>
    %cst_7 = arith.constant dense<0.000000e+00> : vector<8xf32>
    %10 = vector.multi_reduction <add>, %7, %cst_7 [1] : vector<8x256xf32> to vector<8xf32>
    %11 = vector.shape_cast %10 : vector<8xf32> to vector<8x1xf32>
    %cst_8 = arith.constant 2.560000e+02 : f32
    %12 = vector.broadcast %cst_8 : f32 to vector<8x1xf32>
    %13 = arith.divf %11, %12 : vector<8x1xf32>
    %14 = arith.mulf %7, %7 : vector<8x256xf32>
    %cst_9 = arith.constant dense<0.000000e+00> : vector<8xf32>
    %15 = vector.multi_reduction <add>, %14, %cst_9 [1] : vector<8x256xf32> to vector<8xf32>
    %16 = vector.shape_cast %15 : vector<8xf32> to vector<8x1xf32>
    %cst_10 = arith.constant 2.560000e+02 : f32
    %17 = vector.broadcast %cst_10 : f32 to vector<8x1xf32>
    %18 = arith.divf %16, %17 : vector<8x1xf32>
    %19 = arith.mulf %13, %13 : vector<8x1xf32>
    %20 = arith.subf %18, %19 : vector<8x1xf32>
    %cst_11 = arith.constant 9.99999974E-6 : f32
    %21 = vector.broadcast %cst_11 : f32 to vector<8x1xf32>
    %22 = arith.addf %20, %21 : vector<8x1xf32>
    %23 = math.rsqrt %22 : vector<8x1xf32>
    %24 = arith.mulf %8, %23 : vector<8x1xf32>
    %25 = vector.broadcast %24 : vector<8x1xf32> to vector<8x256xf32>
    %26 = arith.mulf %7, %25 : vector<8x256xf32>
    %27 = arith.mulf %13, %24 : vector<8x1xf32>
    %28 = arith.subf %9, %27 : vector<8x1xf32>
    %29 = vector.broadcast %28 : vector<8x1xf32> to vector<8x256xf32>
    %30 = arith.addf %26, %29 : vector<8x256xf32>
    %cst_12 = arith.constant 0.000000e+00 : f32
    %31 = vector.broadcast %cst_12 : f32 to vector<8x256xf32>
    %32 = arith.maximumf %30, %31 : vector<8x256xf32>
    %c17_i32 = arith.constant 17 : i32
    %33 = tpu.dynamic_rotate %32 by %c17_i32 dim 1 : vector<8x256xf32>, i32 -> vector<8x256xf32>
    %34 = vector.extract_strided_slice %1 {offsets = [0, 0], sizes = [1, 256], strides = [1, 1]} : vector<8x256xf32> to vector<1x256xf32>
    %35 = vector.broadcast %34 : vector<1x256xf32> to vector<8x256xf32>
    %36 = arith.mulf %33, %35 : vector<8x256xf32>
    %c0_13 = arith.constant 0 : index
    %c0_14 = arith.constant 0 : index
    %37 = vector.load %arg8[%c0_13, %c0_14] : memref<72x256xf32, #tpu.memory_space<vmem>>, vector<8x256xf32>
    tpu.vector_store %arg8[%c0_13, %c0_14], %36 {strides = array<i32>} : memref<72x256xf32, #tpu.memory_space<vmem>>, vector<8x256xf32>,
    %c16_i32 = arith.constant 16 : i32
    %38 = tpu.dynamic_rotate %32 by %c16_i32 dim 1 : vector<8x256xf32>, i32 -> vector<8x256xf32>
    %39 = vector.extract_strided_slice %1 {offsets = [1, 0], sizes = [1, 256], strides = [1, 1]} : vector<8x256xf32> to vector<1x256xf32>
    %40 = vector.broadcast %39 : vector<1x256xf32> to vector<8x256xf32>
    %41 = arith.mulf %38, %40 : vector<8x256xf32>
    %c8 = arith.constant 8 : index
    %c0_15 = arith.constant 0 : index
    %42 = vector.load %arg8[%c8, %c0_15] : memref<72x256xf32, #tpu.memory_space<vmem>>, vector<8x256xf32>
    tpu.vector_store %arg8[%c8, %c0_15], %41 {strides = array<i32>} : memref<72x256xf32, #tpu.memory_space<vmem>>, vector<8x256xf32>,
    %c15_i32 = arith.constant 15 : i32
    %43 = tpu.dynamic_rotate %32 by %c15_i32 dim 1 : vector<8x256xf32>, i32 -> vector<8x256xf32>
    %44 = vector.extract_strided_slice %1 {offsets = [2, 0], sizes = [1, 256], strides = [1, 1]} : vector<8x256xf32> to vector<1x256xf32>
    %45 = vector.broadcast %44 : vector<1x256xf32> to vector<8x256xf32>
    %46 = arith.mulf %43, %45 : vector<8x256xf32>
    %c16 = arith.constant 16 : index
    %c0_16 = arith.constant 0 : index
    %47 = vector.load %arg8[%c16, %c0_16] : memref<72x256xf32, #tpu.memory_space<vmem>>, vector<8x256xf32>
    tpu.vector_store %arg8[%c16, %c0_16], %46 {strides = array<i32>} : memref<72x256xf32, #tpu.memory_space<vmem>>, vector<8x256xf32>,
    %c1_i32 = arith.constant 1 : i32
    %48 = tpu.dynamic_rotate %32 by %c1_i32 dim 1 : vector<8x256xf32>, i32 -> vector<8x256xf32>
    %49 = vector.extract_strided_slice %1 {offsets = [3, 0], sizes = [1, 256], strides = [1, 1]} : vector<8x256xf32> to vector<1x256xf32>
    %50 = vector.broadcast %49 : vector<1x256xf32> to vector<8x256xf32>
    %51 = arith.mulf %48, %50 : vector<8x256xf32>
    %c24 = arith.constant 24 : index
    %c0_17 = arith.constant 0 : index
    %52 = vector.load %arg8[%c24, %c0_17] : memref<72x256xf32, #tpu.memory_space<vmem>>, vector<8x256xf32>
    tpu.vector_store %arg8[%c24, %c0_17], %51 {strides = array<i32>} : memref<72x256xf32, #tpu.memory_space<vmem>>, vector<8x256xf32>,
    %c32 = arith.constant 32 : index
    %c0_18 = arith.constant 0 : index
    %53 = vector.load %arg8[%c32, %c0_18] : memref<72x256xf32, #tpu.memory_space<vmem>>, vector<8x256xf32>
    tpu.vector_store %arg8[%c32, %c0_18], %32 {strides = array<i32>} : memref<72x256xf32, #tpu.memory_space<vmem>>, vector<8x256xf32>,
    %c255_i32 = arith.constant 255 : i32
    %54 = tpu.dynamic_rotate %32 by %c255_i32 dim 1 : vector<8x256xf32>, i32 -> vector<8x256xf32>
    %55 = vector.extract_strided_slice %1 {offsets = [4, 0], sizes = [1, 256], strides = [1, 1]} : vector<8x256xf32> to vector<1x256xf32>
    %56 = vector.broadcast %55 : vector<1x256xf32> to vector<8x256xf32>
    %57 = arith.mulf %54, %56 : vector<8x256xf32>
    %c40 = arith.constant 40 : index
    %c0_19 = arith.constant 0 : index
    %58 = vector.load %arg8[%c40, %c0_19] : memref<72x256xf32, #tpu.memory_space<vmem>>, vector<8x256xf32>
    tpu.vector_store %arg8[%c40, %c0_19], %57 {strides = array<i32>} : memref<72x256xf32, #tpu.memory_space<vmem>>, vector<8x256xf32>,
    %c241_i32 = arith.constant 241 : i32
    %59 = tpu.dynamic_rotate %32 by %c241_i32 dim 1 : vector<8x256xf32>, i32 -> vector<8x256xf32>
    %60 = vector.extract_strided_slice %1 {offsets = [5, 0], sizes = [1, 256], strides = [1, 1]} : vector<8x256xf32> to vector<1x256xf32>
    %61 = vector.broadcast %60 : vector<1x256xf32> to vector<8x256xf32>
    %62 = arith.mulf %59, %61 : vector<8x256xf32>
    %c48 = arith.constant 48 : index
    %c0_20 = arith.constant 0 : index
    %63 = vector.load %arg8[%c48, %c0_20] : memref<72x256xf32, #tpu.memory_space<vmem>>, vector<8x256xf32>
    tpu.vector_store %arg8[%c48, %c0_20], %62 {strides = array<i32>} : memref<72x256xf32, #tpu.memory_space<vmem>>, vector<8x256xf32>,
    %c240_i32 = arith.constant 240 : i32
    %64 = tpu.dynamic_rotate %32 by %c240_i32 dim 1 : vector<8x256xf32>, i32 -> vector<8x256xf32>
    %65 = vector.extract_strided_slice %1 {offsets = [6, 0], sizes = [1, 256], strides = [1, 1]} : vector<8x256xf32> to vector<1x256xf32>
    %66 = vector.broadcast %65 : vector<1x256xf32> to vector<8x256xf32>
    %67 = arith.mulf %64, %66 : vector<8x256xf32>
    %c56 = arith.constant 56 : index
    %c0_21 = arith.constant 0 : index
    %68 = vector.load %arg8[%c56, %c0_21] : memref<72x256xf32, #tpu.memory_space<vmem>>, vector<8x256xf32>
    tpu.vector_store %arg8[%c56, %c0_21], %67 {strides = array<i32>} : memref<72x256xf32, #tpu.memory_space<vmem>>, vector<8x256xf32>,
    %c239_i32 = arith.constant 239 : i32
    %69 = tpu.dynamic_rotate %32 by %c239_i32 dim 1 : vector<8x256xf32>, i32 -> vector<8x256xf32>
    %70 = vector.extract_strided_slice %1 {offsets = [7, 0], sizes = [1, 256], strides = [1, 1]} : vector<8x256xf32> to vector<1x256xf32>
    %71 = vector.broadcast %70 : vector<1x256xf32> to vector<8x256xf32>
    %72 = arith.mulf %69, %71 : vector<8x256xf32>
    %c64 = arith.constant 64 : index
    %c0_22 = arith.constant 0 : index
    %73 = vector.load %arg8[%c64, %c0_22] : memref<72x256xf32, #tpu.memory_space<vmem>>, vector<8x256xf32>
    tpu.vector_store %arg8[%c64, %c0_22], %72 {strides = array<i32>} : memref<72x256xf32, #tpu.memory_space<vmem>>, vector<8x256xf32>,
    %c0_23 = arith.constant 0 : index
    %c0_24 = arith.constant 0 : index
    %74 = vector.load %arg4[%c0_23, %c0_24] : memref<8x72xf32, #tpu.memory_space<vmem>>, vector<8x72xf32>
    %c0_25 = arith.constant 0 : index
    %c0_26 = arith.constant 0 : index
    %75 = vector.load %arg8[%c0_25, %c0_26] : memref<72x256xf32, #tpu.memory_space<vmem>>, vector<72x256xf32>
    %cst_27 = arith.constant dense<0.000000e+00> : vector<8x256xf32>
    %76 = tpu.matmul %74, %75, %cst_27 {dimension_numbers = #tpu.dot_dimension_numbers<[1], [0], [0], [1], [0, 0, 1, 1], [], []>} : vector<8x72xf32>, vector<72x256xf32>, vector<8x256xf32> -> vector<8x256xf32>
    %77 = vector.extract_strided_slice %2 {offsets = [0, 3], sizes = [8, 1], strides = [1, 1]} : vector<8x9xf32> to vector<8x1xf32>
    %78 = vector.broadcast %77 : vector<8x1xf32> to vector<8x256xf32>
    %79 = arith.addf %76, %78 : vector<8x256xf32>
    %80 = vector.extract_strided_slice %2 {offsets = [0, 4], sizes = [8, 1], strides = [1, 1]} : vector<8x9xf32> to vector<8x1xf32>
    %81 = vector.extract_strided_slice %2 {offsets = [0, 5], sizes = [8, 1], strides = [1, 1]} : vector<8x9xf32> to vector<8x1xf32>
    %cst_28 = arith.constant dense<0.000000e+00> : vector<8xf32>
    %82 = vector.multi_reduction <add>, %79, %cst_28 [1] : vector<8x256xf32> to vector<8xf32>
    %83 = vector.shape_cast %82 : vector<8xf32> to vector<8x1xf32>
    %cst_29 = arith.constant 2.560000e+02 : f32
    %84 = vector.broadcast %cst_29 : f32 to vector<8x1xf32>
    %85 = arith.divf %83, %84 : vector<8x1xf32>
    %86 = arith.mulf %79, %79 : vector<8x256xf32>
    %cst_30 = arith.constant dense<0.000000e+00> : vector<8xf32>
    %87 = vector.multi_reduction <add>, %86, %cst_30 [1] : vector<8x256xf32> to vector<8xf32>
    %88 = vector.shape_cast %87 : vector<8xf32> to vector<8x1xf32>
    %cst_31 = arith.constant 2.560000e+02 : f32
    %89 = vector.broadcast %cst_31 : f32 to vector<8x1xf32>
    %90 = arith.divf %88, %89 : vector<8x1xf32>
    %91 = arith.mulf %85, %85 : vector<8x1xf32>
    %92 = arith.subf %90, %91 : vector<8x1xf32>
    %cst_32 = arith.constant 9.99999974E-6 : f32
    %93 = vector.broadcast %cst_32 : f32 to vector<8x1xf32>
    %94 = arith.addf %92, %93 : vector<8x1xf32>
    %95 = math.rsqrt %94 : vector<8x1xf32>
    %96 = arith.mulf %80, %95 : vector<8x1xf32>
    %97 = vector.broadcast %96 : vector<8x1xf32> to vector<8x256xf32>
    %98 = arith.mulf %79, %97 : vector<8x256xf32>
    %99 = arith.mulf %85, %96 : vector<8x1xf32>
    %100 = arith.subf %81, %99 : vector<8x1xf32>
    %101 = vector.broadcast %100 : vector<8x1xf32> to vector<8x256xf32>
    %102 = arith.addf %98, %101 : vector<8x256xf32>
    %cst_33 = arith.constant 0.000000e+00 : f32
    %103 = vector.broadcast %cst_33 : f32 to vector<8x256xf32>
    %104 = arith.maximumf %102, %103 : vector<8x256xf32>
    %c0_34 = arith.constant 0 : index
    %c0_35 = arith.constant 0 : index
    %105 = vector.load %arg5[%c0_34, %c0_35] : memref<8x8xf32, #tpu.memory_space<vmem>>, vector<8x8xf32>
    %cst_36 = arith.constant dense<0.000000e+00> : vector<8x256xf32>
    %106 = tpu.matmul %105, %104, %cst_36 {dimension_numbers = #tpu.dot_dimension_numbers<[1], [0], [0], [1], [0, 0, 1, 1], [], []>} : vector<8x8xf32>, vector<8x256xf32>, vector<8x256xf32> -> vector<8x256xf32>
    %107 = vector.extract_strided_slice %2 {offsets = [0, 6], sizes = [8, 1], strides = [1, 1]} : vector<8x9xf32> to vector<8x1xf32>
    %108 = vector.broadcast %107 : vector<8x1xf32> to vector<8x256xf32>
    %109 = arith.addf %106, %108 : vector<8x256xf32>
    %110 = vector.extract_strided_slice %2 {offsets = [0, 7], sizes = [8, 1], strides = [1, 1]} : vector<8x9xf32> to vector<8x1xf32>
    %111 = vector.extract_strided_slice %2 {offsets = [0, 8], sizes = [8, 1], strides = [1, 1]} : vector<8x9xf32> to vector<8x1xf32>
    %cst_37 = arith.constant dense<0.000000e+00> : vector<8xf32>
    %112 = vector.multi_reduction <add>, %109, %cst_37 [1] : vector<8x256xf32> to vector<8xf32>
    %113 = vector.shape_cast %112 : vector<8xf32> to vector<8x1xf32>
    %cst_38 = arith.constant 2.560000e+02 : f32
    %114 = vector.broadcast %cst_38 : f32 to vector<8x1xf32>
    %115 = arith.divf %113, %114 : vector<8x1xf32>
    %116 = arith.mulf %109, %109 : vector<8x256xf32>
    %cst_39 = arith.constant dense<0.000000e+00> : vector<8xf32>
    %117 = vector.multi_reduction <add>, %116, %cst_39 [1] : vector<8x256xf32> to vector<8xf32>
    %118 = vector.shape_cast %117 : vector<8xf32> to vector<8x1xf32>
    %cst_40 = arith.constant 2.560000e+02 : f32
    %119 = vector.broadcast %cst_40 : f32 to vector<8x1xf32>
    %120 = arith.divf %118, %119 : vector<8x1xf32>
    %121 = arith.mulf %115, %115 : vector<8x1xf32>
    %122 = arith.subf %120, %121 : vector<8x1xf32>
    %cst_41 = arith.constant 9.99999974E-6 : f32
    %123 = vector.broadcast %cst_41 : f32 to vector<8x1xf32>
    %124 = arith.addf %122, %123 : vector<8x1xf32>
    %125 = math.rsqrt %124 : vector<8x1xf32>
    %126 = arith.mulf %110, %125 : vector<8x1xf32>
    %127 = vector.broadcast %126 : vector<8x1xf32> to vector<8x256xf32>
    %128 = arith.mulf %109, %127 : vector<8x256xf32>
    %129 = arith.mulf %115, %126 : vector<8x1xf32>
    %130 = arith.subf %111, %129 : vector<8x1xf32>
    %131 = vector.broadcast %130 : vector<8x1xf32> to vector<8x256xf32>
    %132 = arith.addf %128, %131 : vector<8x256xf32>
    %133 = arith.addf %132, %0 : vector<8x256xf32>
    %cst_42 = arith.constant 0.000000e+00 : f32
    %134 = vector.broadcast %cst_42 : f32 to vector<8x256xf32>
    %135 = arith.maximumf %133, %134 : vector<8x256xf32>
    %c0_43 = arith.constant 0 : index
    %c0_44 = arith.constant 0 : index
    %136 = vector.load %arg7[%c0_43, %c0_44] : memref<8x256xf32, #tpu.memory_space<vmem>>, vector<8x256xf32>
    tpu.vector_store %arg7[%c0_43, %c0_44], %135 {strides = array<i32>} : memref<8x256xf32, #tpu.memory_space<vmem>>, vector<8x256xf32>,
    return
  }
  func.func @transform_0(%arg0: i32) -> (i32, i32) {
    %c0_i32 = arith.constant 0 : i32
    %c0_i32_0 = arith.constant 0 : i32
    return %c0_i32, %arg0 : i32, i32
  }
  func.func @transform_1(%arg0: i32) -> (i32, i32) {
    %c0_i32 = arith.constant 0 : i32
    %c0_i32_0 = arith.constant 0 : i32
    %c0_i32_1 = arith.constant 0 : i32
    return %c0_i32, %c0_i32_0 : i32, i32
  }
  func.func @transform_2(%arg0: i32) -> (i32, i32) {
    %c0_i32 = arith.constant 0 : i32
    %c0_i32_0 = arith.constant 0 : i32
    %c0_i32_1 = arith.constant 0 : i32
    return %c0_i32, %c0_i32_0 : i32, i32
  }
  func.func @transform_3(%arg0: i32) -> (i32, i32) {
    %c0_i32 = arith.constant 0 : i32
    %c0_i32_0 = arith.constant 0 : i32
    %c0_i32_1 = arith.constant 0 : i32
    return %c0_i32, %c0_i32_0 : i32, i32
  }
  func.func @transform_4(%arg0: i32) -> (i32, i32) {
    %c0_i32 = arith.constant 0 : i32
    %c0_i32_0 = arith.constant 0 : i32
    %c0_i32_1 = arith.constant 0 : i32
    return %c0_i32, %c0_i32_0 : i32, i32
  }
  func.func @transform_5(%arg0: i32) -> (i32, i32) {
    %c0_i32 = arith.constant 0 : i32
    %c0_i32_0 = arith.constant 0 : i32
    %c0_i32_1 = arith.constant 0 : i32
    return %c0_i32, %c0_i32_0 : i32, i32
  }
  func.func @transform_6(%arg0: i32) -> (i32, i32) {
    %c0_i32 = arith.constant 0 : i32
    %c0_i32_0 = arith.constant 0 : i32
    return %c0_i32, %arg0 : i32, i32
  }
}

</mosaic_0001>

<bundles_post_ra>
// kernel: tpu_custom_call.1
= control target key start
LH: loop header
LB: loop body
LE: loop exit
PB: predicated region body
PF: predicated region fallthrough
CT: control target
= control target key end

     0   :  { %11 = vsyncpa [#allocation4], 0  ;;  %s1651_s0 = inlined_call_operand.hbm [shape: f32[8,512], index: 0, kind: input, shape index: {}]   ;;  %s1652_s1 = inlined_call_operand.hbm [shape: f32[8,256], index: 1, kind: input, shape index: {}]   ;;  %s1653_s2 = inlined_call_operand.hbm [shape: f32[8,8], index: 2, kind: input, shape index: {}]   ;;  %s1654_s3 = inlined_call_operand.hbm [shape: f32[8,72], index: 3, kind: input, shape index: {}]   ;;  %s1655_s4 = inlined_call_operand.hbm [shape: f32[8,8], index: 4, kind: input, shape index: {}]   ;;  %s1656_s5 = inlined_call_operand.hbm [shape: f32[8,9], index: 5, kind: input, shape index: {}]   ;;  %s1657_s6 = inlined_call_operand.hbm [shape: f32[8,512], index: 6, kind: output, shape index: {}]  }
   0x1   :  { %13 = vsyncpa [#allocation4 + $0x1], 0 }
   0x2   :  { %14 = vsyncpa [#allocation7], 0 }
   0x3   :  { %15 = vsyncpa [#allocation10], 0 }
   0x4   :  { %16 = vsyncpa [#allocation13], 0 }
   0x5   :  { %17 = vsyncpa [#allocation5], 0 }
   0x6   :  { %19 = vsyncpa [#allocation5 + $0x1], 0  ;;  %s1389_s21 = smov 0   ;;  %s1391_s22 = smov 0  }
   0x7   :  { %s1393_s23 = smov 0   ;;  %s1395_s24 = smov 0  }
   0x8 LB: > { %s199_s27 = sshll.u32 %s1652_s1, 4  ;;  %s1413_s28 = sadd.s32 4294967295, %s1329_s24   ;;  %s1329_s24 = sphi %s1395_s24, %s1668_s24   ;;  %s1325_s23 = sphi %s1393_s23, %s1667_s23   ;;  %s1321_s22 = sphi %s1391_s22, %s1666_s22   ;;  %s1317_s21 = sphi %s1389_s21, %s1665_s21   ;;  %s200_s27 = int_to_ptr.hbm [resolvable:$true] %s199_s27 }
   0x9   : > { %p908_p0 = scmp.ge.s32.totalorder %s1329_s24, 1  ;;  %p46_p1 = scmp.eq.s32.totalorder %s1413_s28, 0 }
   0xa   : > { %p187_p2 = scmp.lt.s32.totalorder %s1329_s24, 3  ;;  %s1331_s30 = smov [#allocation6]  }
   0xb   : > { %s201_s7 = sshll.u32 %s1331_s30, 4  ;;  %s223_s10 = sshll.u32 %s1654_s3, 4  ;;  %s202_s7 = int_to_ptr.vmem [resolvable:$true] %s201_s7  ;;  %s224_s10 = int_to_ptr.hbm [resolvable:$true] %s223_s10 }
   0xc   : > { %p1418_p3 = pnand %p908_p0, %p187_p2  ;;  %s1332_s12 = smov [#allocation9]  }
   0xd   : > { %s225_s13 = sshll.u32 %s1332_s12, 4  ;;  %s211_s16 = sshll.u32 %s1653_s2, 4  ;;  %s226_s13 = int_to_ptr.vmem [resolvable:$true] %s225_s13  ;;  %s212_s16 = int_to_ptr.hbm [resolvable:$true] %s211_s16 }
   0xe   : > { %p963_p5 = pneg %p1418_p3  ;;  %s235_s19 = sshll.u32 %s1655_s4, 4  ;;  %s236_s19 = int_to_ptr.hbm [resolvable:$true] %s235_s19 }
   0xf   : > { %s1333_s20 = smov [#allocation8]   ;;  %s1334_s26 = smov [#allocation11]  }
  0x10   : > { %p1430_p6 = pnand %p963_p5, %p46_p1  ;;  %s213_s25 = sshll.u32 %s1333_s20, 4  ;;  %s214_s25 = int_to_ptr.vmem [resolvable:$true] %s213_s25 }
  0x11   : > { %s247_s8 = sshll.u32 %s1656_s5, 4  ;;  %s1335_s9 = smov [#allocation12]   ;;  %s248_s8 = int_to_ptr.hbm [resolvable:$true] %s247_s8 }
  0x12   : > { %966 = dma.hbm_to_vmem [thread:$0]  (!%p1430_p6), %s200_s27, 256, %s202_s7, [#allocation7]  }
  0x13   : > { %972 = dma.hbm_to_vmem [thread:$0]  (!%p1430_p6), %s224_s10, 128, %s226_s13, [#allocation10]  }
  0x14   : > { %969 = dma.hbm_to_vmem [thread:$0]  (!%p1430_p6), %s212_s16, 128, %s214_s25, [#allocation7]  }
  0x15   : > { %s237_s27 = sshll.u32 %s1334_s26, 4  ;;  %s249_s10 = sshll.u32 %s1335_s9, 4  ;;  %s238_s27 = int_to_ptr.vmem [resolvable:$true] %s237_s27  ;;  %s250_s10 = int_to_ptr.vmem [resolvable:$true] %s249_s10 }
  0x16   : > { %975 = dma.hbm_to_vmem [thread:$0]  (!%p1430_p6), %s236_s19, 128, %s238_s27, [#allocation10]  }
  0x17   : > { %978 = dma.hbm_to_vmem [thread:$0]  (!%p1430_p6), %s248_s8, 128, %s250_s10, [#allocation13]  }
  0x18   : > { %s907_s12 = sadd.s32 4294967294, %s1329_s24   ;;  %s1455_s13 = sadd.s32 1, %s1329_s24  }
  0x19   : > { %s32_s14 = sadd.s32 1, %s1325_s23  ;;  %s29_s15 = ssub.s32 %s1329_s24, %s1455_s13 }
  0x1a   : > { %p39_p7 = scmp.ne.s32.totalorder %s1325_s23, %s1321_s22  ;;  %p30_p8 = scmp.eq.s32.totalorder %s29_s15, 0 }
  0x1b   : > { %p40_p9 = scmp.eq.s32.totalorder %s1329_s24, 0  ;;  %p45_p10 = scmp.ne.s32.totalorder %s1321_s22, %s1317_s21 }
  0x1c   : > { %p174_p11 = scmp.eq.s32.totalorder %s1413_s28, 1  ;;  %p180_p0 = scmp.eq.s32.totalorder %s907_s12, 1 }
  0x1d   : > { %s1467_s16 = scalar_select %p30_p8, %s1325_s23, %s32_s14  }
  0x1e   : > { %p1471_p12 = por %p46_p1, %p45_p10  ;;  %p1475_p13 = por %p174_p11, %p39_p7 }
  0x1f   : > { %p41_p2 = por %p40_p9, %p39_p7  ;;  %s260_s18 = sand.u32 1, %s1325_s23  }
  0x20   : > { %p1480_p5 = por %p180_p0, %p45_p10  ;;  %p992_p6 = scmp.lt.s32.totalorder %s1329_s24, 2 }
  0x21   : > { %s915_s20 = sshll.u32 %s260_s18, 4  ;;  %s937_s25 = sshll.u32 %s1329_s24, 4 }
  0x22   : > { %s269_s30 = scalar_lea.hbm %s1651_s0, %s937_s25  ;;  %s264_s8 = scalar_lea.vmem [#allocation3], %s915_s20 }
  0x23   : > { %s271_s7 = sshll.u32 %s269_s30, 4  ;;  %s273_s9 = sshll.u32 %s264_s8, 4  ;;  %s272_s7 = int_to_ptr.hbm [resolvable:$true] %s271_s7  ;;  %s274_s9 = int_to_ptr.vmem [resolvable:$true] %s273_s9 }
  0x24   : > { %p1489_p8 = pnand %p992_p6, %p41_p2  ;;  %s261_s12 = scalar_lea.sflag [#allocation4], %s260_s18 }
  0x25   : > { %s1221_s14 = sshra.s32 %s272_s7, 4  ;;  %s1228_s20 = scalar_lea.hbm %s1651_s0, 32  ;;  %s1222_s14 = int_to_ptr.hbm [resolvable:$true] %s1221_s14 }
  0x26   : > { %s1223_s15 = scalar_lea.hbm %s1222_s14, 16  ;;  %p1225_p9 = pneg %p1489_p8 }
  0x27   : > { %p1224_p7 = scmp.ne.s32.totalorder %s1222_s14, %s1223_s15  ;;  %p1229_p0 = scmp.lt.s32.totalorder %s1222_s14, %s1651_s0 }
  0x28   : > { %p1230_p2 = scmp.lt.s32.totalorder %s1228_s20, %s1223_s15 }
  0x29   : > { %p1226_p10 = pnand %p1225_p9, %p1224_p7 }
  0x2a   : > { %p1231_p6 = por %p1230_p2, %p1229_p0 }
  0x2b   : > { %p1227_p11 = pneg %p1226_p10 }
  0x2d   : > { %p1232_p4 = pnand %p1231_p6, %p1227_p11 }
  0x2f   : > { %1235 = shalt.err (!%p1232_p4)
}
  0x30   : > { %982 = dma.hbm_to_vmem [thread:$0]  (!%p1489_p8), %s272_s7, 256, %s274_s9, %s261_s12  }
  0x31   : > { %282 = sbr.rel (%p1418_p3) target bundleno = 1754 (0x6da), region = 44  ;;  %s1506_s18 = sand.u32 (!%p1418_p3), 1, %s1321_s22  }
  0x32   : > { %s919_s8 = sshll.u32 (!%p1418_p3), %s1506_s18, 4  ;;  %s285_s25 = scalar_lea.sflag (!%p1418_p3), [#allocation4], %s1506_s18 }
  0x33   : > { %s288_s14 = scalar_lea.vmem (!%p1418_p3), [#allocation3], %s919_s8 }
  0x36   : > { %1296 = dma.done.wait (%p1471_p12), %s285_s25, 256  }
  0x37   : > { %1298 = vsyncadd (%p1471_p12), %s285_s25, 4294967040 }
  0x38   : > { %1300 = dma.done.wait (%p46_p1), [#allocation7], 384  }
  0x39   : > { %1302 = vsyncadd (%p46_p1), [#allocation7], 4294966912 }
  0x3a   : > { %1304 = dma.done.wait (%p46_p1), [#allocation10], 256  }
  0x3b   : > { %1306 = vsyncadd (%p46_p1), [#allocation10], 4294967040 }
  0x3c   : > { %1308 = dma.done.wait (%p46_p1), [#allocation13], 128  }
  0x3d   : > { %1310 = vsyncadd (%p46_p1), [#allocation13], 4294967168  ;;  %v1336_v0 = vmov 0   ;;  %vm356_vm0 = vcmask 64512   ;;  %v1528_v1 = vld [vmem:[%s288_s14] sm:$0xff]  ;;  %v1530_v2 = vld [vmem:[%s288_s14 + $0x8] sm:$0xff]  ;;  %v457_v49 = vlaneseq }
  0x3e   : > { %1054 = vset.pattern.permute.xlu0 %v1336_v0  ;;  %v350_v3 = vld [vmem:[#allocation8] sm:$0xff]  ;;  %375 = vmatpush.msra.mxu0 %v1528_v1  ;;  %v1534_v4 = vld [vmem:[#allocation12] sm:$0xff]  ;;  %v1337_v14 = vmov 256.0   ;;  %v1338_v18 = vmov 1   ;;  %s1339_s29 = smov 1   ;;  %v1340_v38 = vmov 2  }
  0x3f   : > { %395 = vmatpush.msra.mxu1 %v1530_v2  ;;  %926 = vmatmul.msk.f32.vlgmr.msra.gmra.mxu0 %vm356_vm0, %v350_v3  ;;  %1063 = vrcp.f32 %v1337_v14  ;;  %s1341_s11 = smov 112   ;;  %s1342_s7 = smov 111   ;;  %v1568_v51 = vand.u32 127, %v457_v49  ;;  %v1570_v52 = vld [vmem:[#allocation6] sm:$0xff]  ;;  %v1572_v53 = vld [vmem:[#allocation6 + $0x8] sm:$0xff]  ;;  %vm584_vm13 = vcmask 588800  }
  0x40   : > { %927 = vmatmul.msk.f32.vlgmr.msra.gmra.mxu1 %vm356_vm0, %v350_v3  ;;  %353 = vperm.xlu0 %1054, %v1534_v4   ;;  %s1343_s9 = smov 113   ;;  %s1344_s10 = smov 16   ;;  %v555_v54 = vperm.slane %v1570_v52, 7  ;;  %v556_v55 = vperm.slane %v1572_v53, 7  ;;  %v542_v62 = vperm.slane %v1570_v52, 6  ;;  %v543_v63 = vperm.slane %v1572_v53, 6 }
  0x41   : > { %1055 = vset.pattern.permute.xlu2 %v1338_v18  ;;  %s1345_s12 = smov 127   ;;  %s1346_s15 = smov 15   ;;  %vm552_vm5 = vcmp.lt.s32.totalorder %v1568_v51, 111  ;;  %vm539_vm6 = vcmp.lt.s32.totalorder %v1568_v51, 112  ;;  %vm526_vm7 = vcmp.lt.s32.totalorder %v1568_v51, 113  ;;  %vm513_vm8 = vcmp.lt.s32.totalorder %v1568_v51, 127 }
  0x42   : > { %s1347_s26 = smov 17   ;;  %v517_v18 = vperm.slane %v1572_v53, 4  ;;  %vm498_vm9 = vcmp.lt.s32.totalorder %v1568_v51, 1  ;;  %vm485_vm10 = vcmp.lt.s32.totalorder %v1568_v51, 15  ;;  %vm472_vm11 = vcmp.lt.s32.totalorder %v1568_v51, 16  ;;  %s938_s20 = sshll.u32 %s1413_s28, 4 }
  0x43   : > { %vm459_vm12 = vcmp.lt.s32.totalorder %v1568_v51, 17  ;;  %s784_s25 = scalar_lea.hbm %s1657_s6, %s938_s20  ;;  %s342_s14 = scalar_lea.vmem [#allocation14], %s919_s8 }
  0x44   : > { %s773_s28 = scalar_lea.sflag [#allocation5], %s1506_s18  ;;  %s1271_s8 = scalar_lea.hbm %s1657_s6, 32 }
  0x45   : > { %v1064_v15 = vpop.eup %1063 }
  0x46   : > { %v404_v16 = vmul.f32 256.0, %v1064_v15  ;;  %vm408_vm1 = vweird.f32 %v1064_v15 }
  0x48   : > { %v405_v17 = vsub.f32 1.0, %v404_v16 }
  0x4a   : > { %v406_v19 = vmul.f32 %v1064_v15, %v405_v17  ;;  %v516_v17 = vperm.slane %v1570_v52, 4 }
  0x4c   : > { %v407_v20 = vadd.f32 %v1064_v15, %v406_v19  ;;  %v1348_v19 = vmov 3  }
  0x4d   : > { %1057 = vset.pattern.permute.xlu0 %v1348_v19 }
  0x4e   : > { %v1539_v21 = vsel %vm408_vm1, %v1064_v15, %v407_v20 }
  0xb2   : > { %v354_v5 = vpop.permute.xlu0 %353 }
  0xbc   : > { %v377_v6 = vpop.f32.mrf.mxu0 }
  0xbd   : > { %v397_v7 = vpop.f32.mrf.mxu1  ;;  %v378_v8 = vadd.f32 %v377_v6, %v354_v5 }
  0xbe   : > { %v398_v9 = vadd.f32 %v397_v7, %v354_v5 }
  0xbf   : > { %v411_v11 = vmul.f32 %v378_v8, %v378_v8 }
  0xc0   : > { %v400_v10 = vadd.f32 %v398_v9, %v378_v8  ;;  %v412_v12 = vmul.f32 %v398_v9, %v398_v9 }
  0xc2   : > { %401 = vadd.xlane.f32.xlu0 %v400_v10  ;;  %v413_v13 = vadd.f32 %v412_v12, %v411_v11  ;;  %v530_v10 = vperm.slane %v1572_v53, 5 }
  0xc4   : > { %414 = vadd.xlane.f32.xlu1 %v413_v13 }
 0x135   : > { %v402_v22 = vpop.xlane.xlu0 %401 }
 0x136   : > { %v410_v23 = vmul.f32 %v1539_v21, %v402_v22 }
 0x137   : > { %v415_v24 = vpop.xlane.xlu1 %414 }
 0x138   : > { %v417_v25 = vmul.f32 %v410_v23, %v410_v23  ;;  %v416_v26 = vmul.f32 %v415_v24, %v1539_v21 }
 0x13a   : > { %v418_v27 = vsub.f32 %v416_v26, %v417_v25 }
 0x13c   : > { %v419_v28 = vadd.f32 1e-05, %v418_v27 }
 0x13e   : > { %1065 = vrsqrt.f32 %v419_v28  ;;  %vm426_vm3 = vweird.f32 %v419_v28 }
 0x144   : > { %v1066_v29 = vpop.eup %1065 }
 0x145   : > { %v421_v30 = vmul.f32 %v1066_v29, %v419_v28  ;;  %vm427_vm2 = vweird.f32 %v1066_v29  ;;  %v501_v28 = vperm.slane %v1570_v52, 3 }
 0x146   : > { %vm428_vm4 = vmor %vm426_vm3, %vm427_vm2 }
 0x147   : > { %v422_v31 = vmul.f32 %v1066_v29, %v421_v30 }
 0x149   : > { %v423_v32 = vmul.f32 0.5, %v422_v31 }
 0x14b   : > { %v424_v33 = vsub.f32 1.5, %v423_v32 }
 0x14d   : > { %v425_v34 = vmul.f32 %v1066_v29, %v424_v33 }
 0x14f   : > { %v429_v35 = vsel %vm428_vm4, %v1066_v29, %v425_v34  ;;  %v502_v29 = vperm.slane %v1572_v53, 3  ;;  %v488_v34 = vperm.slane %v1570_v52, 2 }
 0x150   : > { %v430_v36 = vmul.f32 %v429_v35, %v1534_v4  ;;  %v489_v35 = vperm.slane %v1572_v53, 2 }
 0x152   : > { %433 = vperm.xlu2 %1055, %v430_v36   ;;  %v438_v37 = vmul.f32 %v430_v36, %v410_v23 }
 0x154   : > { %440 = vrot.lane.b32.xlu1 %v438_v37, %s1339_s29 }
 0x15a   : > { %1056 = vset.pattern.permute.xlu2 %v1340_v38 }
 0x1ac   : > { %v434_v41 = vpop.permute.xlu2 %433 }
 0x1ad   : > { %v436_v42 = vmul.f32 %v434_v41, %v378_v8  ;;  %v437_v43 = vmul.f32 %v434_v41, %v398_v9  ;;  %v529_v9 = vperm.slane %v1570_v52, 5 }
 0x1c6   : > { %v441_v39 = vpop.permute.xlu1 %440 }
 0x1c7   : > { %v443_v40 = vsub.f32 %v1534_v4, %v441_v39 }
 0x1c9   : > { %446 = vperm.xlu2 %1056, %v443_v40  }
 0x223   : > { %v447_v44 = vpop.permute.xlu2 %446 }
 0x224   : > { %v449_v45 = vadd.f32 %v447_v44, %v436_v42  ;;  %v450_v46 = vadd.f32 %v447_v44, %v437_v43  ;;  %v475_v42 = vperm.slane %v1570_v52, 1  ;;  %v476_v43 = vperm.slane %v1572_v53, 1 }
 0x226   : > { %v1546_v47 = vmax.f32 %v449_v45, 0.0  ;;  %v1548_v48 = vmax.f32 %v450_v46, 0.0 }
 0x228   : > { %537 = vrot.lane.b32.xlu1 %v1548_v48, %s1341_s11  ;;  %494 = vrot.lane.b32.xlu0 %v1546_v47, %s1339_s29 }
 0x229   : > { %548 = vrot.lane.b32.xlu2 %v1546_v47, %s1342_s7 }
 0x230   : > { %524 = vrot.lane.b32.xlu1 %v1548_v48, %s1343_s9  ;;  %470 = vrot.lane.b32.xlu0 %v1548_v48, %s1344_s10 }
 0x231   : > { %550 = vrot.lane.b32.xlu2 %v1548_v48, %s1342_s7 }
 0x238   : > { %511 = vrot.lane.b32.xlu1 %v1548_v48, %s1345_s12  ;;  %581 = vperm.xlu0 %1057, %v1534_v4  }
 0x239   : > { %535 = vrot.lane.b32.xlu2 %v1546_v47, %s1341_s11  ;;  %s788_s11 = sshll.u32 %s784_s25, 4  ;;  %s789_s11 = int_to_ptr.hbm [resolvable:$true] %s788_s11 }
 0x23a   : > { %s1265_s7 = sshra.s32 %s789_s11, 4  ;;  %s1266_s7 = int_to_ptr.hbm [resolvable:$true] %s1265_s7 }
 0x23b   : > { %p1272_p12 = scmp.lt.s32.totalorder %s1266_s7, %s1657_s6 }
 0x240   : > { %481 = vrot.lane.b32.xlu1 %v1546_v47, %s1346_s15 }
 0x241   : > { %522 = vrot.lane.b32.xlu2 %v1546_v47, %s1343_s9  ;;  %s1267_s9 = scalar_lea.hbm %s1266_s7, 16 }
 0x242   : > { %p1268_p1 = scmp.ne.s32.totalorder %s1266_s7, %s1267_s9  ;;  %p1273_p8 = scmp.lt.s32.totalorder %s1271_s8, %s1267_s9 }
 0x244   : > { %p1269_p3 = pnand %p1268_p1, %p1475_p13  ;;  %p1274_p7 = por %p1273_p8, %p1272_p12 }
 0x246   : > { %p1270_p4 = pneg %p1269_p3 }
 0x248   : > { %468 = vrot.lane.b32.xlu1 %v1546_v47, %s1344_s10  ;;  %p1275_p9 = pnand %p1274_p7, %p1270_p4 }
 0x249   : > { %509 = vrot.lane.b32.xlu2 %v1546_v47, %s1345_s12 }
 0x250   : > { %455 = vrot.lane.b32.xlu1 %v1548_v48, %s1347_s26 }
 0x251   : > { %496 = vrot.lane.b32.xlu2 %v1548_v48, %s1339_s29 }
 0x259   : > { %483 = vrot.lane.b32.xlu2 %v1548_v48, %s1346_s15 }
 0x261   : > { %453 = vrot.lane.b32.xlu2 %v1546_v47, %s1347_s26 }
 0x283   : > { %v549_v50 = vpop.permute.xlu2 %548 }
 0x28b   : > { %v551_v56 = vpop.permute.xlu2 %550 }
 0x28c   : > { %v553_v57 = vsel %vm552_vm5, %v549_v50, %v551_v56  ;;  %v554_v58 = vsel %vm552_vm5, %v551_v56, %v549_v50  ;;  %v462_v50 = vperm.slane %v1570_v52, 0 }
 0x28d   : > { %v557_v59 = vmul.f32 %v555_v54, %v553_v57  ;;  %v558_v60 = vmul.f32 %v556_v55, %v554_v58  ;;  %v463_v54 = vperm.slane %v1572_v53, 0 }
 0x28f   : > { %595 = vmatpush.msra.mxu2 %v557_v59  ;;  %615 = vmatpush.msra.mxu3 %v558_v60 }
 0x293   : > { %v536_v61 = vpop.permute.xlu2 %535 }
 0x29a   : > { %v538_v0 = vpop.permute.xlu1 %537  ;;  %v495_v25 = vpop.permute.xlu0 %494 }
 0x29b   : > { %v540_v3 = vsel %vm539_vm6, %v536_v61, %v538_v0  ;;  %v541_v5 = vsel %vm539_vm6, %v538_v0, %v536_v61  ;;  %v523_v6 = vpop.permute.xlu2 %522  ;;  %v561_v61 = vld [vmem:[#allocation9] sm:$0xff] }
 0x29c   : > { %v544_v7 = vmul.f32 %v542_v62, %v540_v3  ;;  %v545_v8 = vmul.f32 %v543_v63, %v541_v5 }
 0x29e   : > { %596 = vmatpush.msra.mxu2 %v544_v7  ;;  %616 = vmatpush.msra.mxu3 %v545_v8  ;;  %v1349_v8 = vmov 4  }
 0x29f   : > { %1058 = vset.pattern.permute.xlu0 %v1349_v8 }
 0x2a2   : > { %v525_v11 = vpop.permute.xlu1 %524  ;;  %v471_v44 = vpop.permute.xlu0 %470 }
 0x2a3   : > { %v527_v12 = vsel %vm526_vm7, %v523_v6, %v525_v11  ;;  %v528_v13 = vsel %vm526_vm7, %v525_v11, %v523_v6  ;;  %v510_v14 = vpop.permute.xlu2 %509 }
 0x2a4   : > { %v531_v15 = vmul.f32 %v529_v9, %v527_v12  ;;  %v532_v16 = vmul.f32 %v530_v10, %v528_v13 }
 0x2a6   : > { %597 = vmatpush.msra.mxu2 %v531_v15  ;;  %617 = vmatpush.msra.mxu3 %v532_v16 }
 0x2aa   : > { %v512_v20 = vpop.permute.xlu1 %511  ;;  %v582_v62 = vpop.permute.xlu0 %581 }
 0x2ab   : > { %v514_v22 = vsel %vm513_vm8, %v510_v14, %v512_v20  ;;  %v515_v23 = vsel %vm513_vm8, %v512_v20, %v510_v14  ;;  %v497_v24 = vpop.permute.xlu2 %496 }
 0x2ac   : > { %v518_v26 = vmul.f32 %v516_v17, %v514_v22  ;;  %v519_v27 = vmul.f32 %v517_v18, %v515_v23  ;;  %v499_v30 = vsel %vm498_vm9, %v495_v25, %v497_v24  ;;  %v500_v31 = vsel %vm498_vm9, %v497_v24, %v495_v25 }
 0x2ad   : > { %v503_v32 = vmul.f32 %v501_v28, %v500_v31  ;;  %v504_v33 = vmul.f32 %v502_v29, %v499_v30  ;;  %v1350_v25 = vmov 5   ;;  %v1351_v28 = vmov 6  }
 0x2ae   : > { %598 = vmatpush.msra.mxu2 %v518_v26  ;;  %618 = vmatpush.msra.mxu3 %v519_v27 }
 0x2af   : > { %1060 = vset.pattern.permute.xlu2 %v1351_v28 }
 0x2b0   : > { %599 = vmatpush.msra.mxu2 %v1546_v47  ;;  %619 = vmatpush.msra.mxu3 %v1548_v48 }
 0x2b2   : > { %v482_v36 = vpop.permute.xlu1 %481  ;;  %600 = vmatpush.msra.mxu2 %v503_v32  ;;  %620 = vmatpush.msra.mxu3 %v504_v33 }
 0x2b3   : > { %v484_v37 = vpop.permute.xlu2 %483 }
 0x2b4   : > { %v486_v38 = vsel %vm485_vm10, %v482_v36, %v484_v37  ;;  %v487_v39 = vsel %vm485_vm10, %v484_v37, %v482_v36  ;;  %v674_v37 = vld [vmem:[#allocation11] sm:$0xff] }
 0x2b5   : > { %v490_v40 = vmul.f32 %v488_v34, %v487_v39  ;;  %v491_v41 = vmul.f32 %v489_v35, %v486_v38 }
 0x2b7   : > { %601 = vmatpush.msra.mxu2 %v490_v40  ;;  %621 = vmatpush.msra.mxu3 %v491_v41 }
 0x2ba   : > { %v469_v45 = vpop.permute.xlu1 %468 }
 0x2bb   : > { %v473_v46 = vsel %vm472_vm11, %v469_v45, %v471_v44  ;;  %v474_v47 = vsel %vm472_vm11, %v471_v44, %v469_v45  ;;  %v454_v55 = vpop.permute.xlu2 %453 }
 0x2bc   : > { %v477_v48 = vmul.f32 %v475_v42, %v474_v47  ;;  %v478_v49 = vmul.f32 %v476_v43, %v473_v46  ;;  %v1352_v47 = vmov 7  }
 0x2bd   : > { %1061 = vset.pattern.permute.xlu1 %v1352_v47 }
 0x2be   : > { %602 = vmatpush.msra.mxu2 %v477_v48  ;;  %622 = vmatpush.msra.mxu3 %v478_v49 }
 0x2c2   : > { %v456_v56 = vpop.permute.xlu1 %455 }
 0x2c3   : > { %v460_v57 = vsel %vm459_vm12, %v454_v55, %v456_v56  ;;  %v461_v58 = vsel %vm459_vm12, %v456_v56, %v454_v55 }
 0x2c4   : > { %v464_v59 = vmul.f32 %v462_v50, %v461_v58  ;;  %v465_v60 = vmul.f32 %v463_v54, %v460_v57 }
 0x2c6   : > { %603 = vmatpush.msra.mxu2 %v464_v59  ;;  %623 = vmatpush.msra.mxu3 %v465_v60 }
 0x2c7   : > { %928 = vmatmul.msk.f32.vlgmr.msra.gmra.mxu2 %vm584_vm13, %v561_v61  ;;  %929 = vmatmul.msk.f32.vlgmr.msra.gmra.mxu3 %vm584_vm13, %v561_v61 }
 0x34a   : > { %v605_v63 = vpop.f32.mrf.mxu2  ;;  %v625_v0 = vpop.f32.mrf.mxu3 }
 0x34b   : > { %v606_v51 = vadd.f32 %v605_v63, %v582_v62  ;;  %v626_v3 = vadd.f32 %v625_v0, %v582_v62 }
 0x34d   : > { %v628_v52 = vadd.f32 %v626_v3, %v606_v51  ;;  %v632_v5 = vmul.f32 %v606_v51, %v606_v51  ;;  %v633_v53 = vmul.f32 %v626_v3, %v626_v3 }
 0x34f   : > { %629 = vadd.xlane.f32.xlu2 %v628_v52  ;;  %v634_v6 = vadd.f32 %v633_v53, %v632_v5 }
 0x351   : > { %635 = vadd.xlane.f32.xlu1 %v634_v6 }
 0x367   : > { %676 = vperm.xlu2 %1060, %v1534_v4  }
 0x3c2   : > { %v630_v7 = vpop.xlane.xlu2 %629 }
 0x3c3   : > { %v631_v9 = vmul.f32 %v630_v7, %v1539_v21 }
 0x3c4   : > { %v636_v10 = vpop.xlane.xlu1 %635 }
 0x3c5   : > { %v638_v11 = vmul.f32 %v631_v9, %v631_v9  ;;  %v637_v12 = vmul.f32 %v636_v10, %v1539_v21 }
 0x3c7   : > { %v639_v13 = vsub.f32 %v637_v12, %v638_v11 }
 0x3c9   : > { %v640_v14 = vadd.f32 1e-05, %v639_v13 }
 0x3ca   : > { %v677_v38 = vpop.permute.xlu2 %676 }
 0x3cb   : > { %1067 = vrsqrt.f32 %v640_v14  ;;  %vm647_vm15 = vweird.f32 %v640_v14 }
 0x3d1   : > { %v1068_v15 = vpop.eup %1067 }
 0x3d2   : > { %v642_v16 = vmul.f32 %v1068_v15, %v640_v14  ;;  %vm648_vm14 = vweird.f32 %v1068_v15 }
 0x3d3   : > { %vm649_vm1 = vmor %vm647_vm15, %vm648_vm14 }
 0x3d4   : > { %v643_v17 = vmul.f32 %v1068_v15, %v642_v16 }
 0x3d6   : > { %v644_v18 = vmul.f32 0.5, %v643_v17 }
 0x3d8   : > { %v645_v19 = vsub.f32 1.5, %v644_v18 }
 0x3da   : > { %v646_v20 = vmul.f32 %v1068_v15, %v645_v19 }
 0x3dc   : > { %v650_v22 = vsel %vm649_vm1, %v1068_v15, %v646_v20 }
 0x3dd   : > { %v651_v23 = vmul.f32 %v650_v22, %v1534_v4 }
 0x3df   : > { %v659_v24 = vmul.f32 %v651_v23, %v631_v9 }
 0x3e1   : > { %661 = vrot.lane.b32.xlu0 %v659_v24, %s1339_s29 }
 0x3e9   : > { %654 = vperm.xlu0 %1058, %v651_v23  }
 0x3f1   : > { %1059 = vset.pattern.permute.xlu0 %v1350_v25 }
 0x453   : > { %v662_v26 = vpop.permute.xlu0 %661 }
 0x454   : > { %v664_v27 = vsub.f32 %v1534_v4, %v662_v26 }
 0x456   : > { %667 = vperm.xlu0 %1059, %v664_v27  }
 0x45b   : > { %v655_v29 = vpop.permute.xlu0 %654 }
 0x45c   : > { %v657_v30 = vmul.f32 %v655_v29, %v606_v51  ;;  %v658_v31 = vmul.f32 %v655_v29, %v626_v3 }
 0x4c8   : > { %v668_v32 = vpop.permute.xlu0 %667 }
 0x4c9   : > { %v670_v33 = vadd.f32 %v668_v32, %v657_v30  ;;  %v671_v34 = vadd.f32 %v668_v32, %v658_v31 }
 0x4cb   : > { %v672_v35 = vmax.f32 %v670_v33, 0.0  ;;  %v673_v36 = vmax.f32 %v671_v34, 0.0 }
 0x4cd   : > { %697 = vmatpush.msrb.mxu0 %v672_v35  ;;  %717 = vmatpush.msrb.mxu1 %v673_v36 }
 0x4ce   : > { %930 = vmatmul.msk.f32.vlgmr.msrb.gmra.mxu0 %vm356_vm0, %v674_v37  ;;  %931 = vmatmul.msk.f32.vlgmr.msrb.gmra.mxu1 %vm356_vm0, %v674_v37 }
 0x54b   : > { %v699_v39 = vpop.f32.mrf.mxu0  ;;  %v719_v40 = vpop.f32.mrf.mxu1 }
 0x54c   : > { %v700_v41 = vadd.f32 %v699_v39, %v677_v38  ;;  %v720_v42 = vadd.f32 %v719_v40, %v677_v38 }
 0x54e   : > { %v722_v43 = vadd.f32 %v720_v42, %v700_v41  ;;  %v726_v44 = vmul.f32 %v700_v41, %v700_v41  ;;  %v727_v45 = vmul.f32 %v720_v42, %v720_v42 }
 0x550   : > { %723 = vadd.xlane.f32.xlu1 %v722_v43  ;;  %v728_v46 = vadd.f32 %v727_v45, %v726_v44 }
 0x558   : > { %729 = vadd.xlane.f32.xlu1 %v728_v46 }
 0x5c3   : > { %v724_v48 = vpop.xlane.xlu1 %723 }
 0x5c4   : > { %v725_v49 = vmul.f32 %v724_v48, %v1539_v21 }
 0x5c6   : > { %v732_v54 = vmul.f32 %v725_v49, %v725_v49 }
 0x5cb   : > { %v730_v50 = vpop.xlane.xlu1 %729 }
 0x5cc   : > { %v731_v55 = vmul.f32 %v730_v50, %v1539_v21  ;;  %v1353_v21 = vmov 8  }
 0x5cd   : > { %1062 = vset.pattern.permute.xlu0 %v1353_v21 }
 0x5ce   : > { %v733_v56 = vsub.f32 %v731_v55, %v732_v54 }
 0x5d0   : > { %v734_v57 = vadd.f32 1e-05, %v733_v56 }
 0x5d2   : > { %1069 = vrsqrt.f32 %v734_v57  ;;  %vm741_vm2 = vweird.f32 %v734_v57 }
 0x5d8   : > { %v1070_v58 = vpop.eup %1069 }
 0x5d9   : > { %v736_v59 = vmul.f32 %v1070_v58, %v734_v57  ;;  %vm742_vm0 = vweird.f32 %v1070_v58 }
 0x5da   : > { %vm743_vm3 = vmor %vm741_vm2, %vm742_vm0 }
 0x5db   : > { %v737_v60 = vmul.f32 %v1070_v58, %v736_v59 }
 0x5dd   : > { %v738_v61 = vmul.f32 0.5, %v737_v60 }
 0x5df   : > { %v739_v62 = vsub.f32 1.5, %v738_v61 }
 0x5e1   : > { %v740_v63 = vmul.f32 %v1070_v58, %v739_v62 }
 0x5e3   : > { %v744_v0 = vsel %vm743_vm3, %v1070_v58, %v740_v63 }
 0x5e4   : > { %v745_v51 = vmul.f32 %v744_v0, %v1534_v4 }
 0x5e6   : > { %748 = vperm.xlu1 %1061, %v745_v51   ;;  %v753_v3 = vmul.f32 %v745_v51, %v725_v49 }
 0x5e8   : > { %755 = vrot.lane.b32.xlu0 %v753_v3, %s1339_s29  ;;  %s786_s29 = sshll.u32 %s342_s14, 4  ;;  %s787_s29 = int_to_ptr.vmem [resolvable:$true] %s786_s29 }
 0x658   : > { %v749_v53 = vpop.permute.xlu1 %748 }
 0x659   : > { %v751_v6 = vmul.f32 %v749_v53, %v700_v41  ;;  %v752_v7 = vmul.f32 %v749_v53, %v720_v42 }
 0x65a   : > { %v756_v52 = vpop.permute.xlu0 %755 }
 0x65b   : > { %v758_v5 = vsub.f32 %v1534_v4, %v756_v52 }
 0x65d   : > { %761 = vperm.xlu0 %1062, %v758_v5  }
 0x6cf   : > { %v762_v8 = vpop.permute.xlu0 %761 }
 0x6d0   : > { %v764_v9 = vadd.f32 %v762_v8, %v751_v6  ;;  %v765_v10 = vadd.f32 %v762_v8, %v752_v7 }
 0x6d2   : > { %v766_v11 = vadd.f32 %v764_v9, %v1528_v1  ;;  %v767_v12 = vadd.f32 %v765_v10, %v1530_v2 }
 0x6d4   : > { %v768_v4 = vmax.f32 %v766_v11, 0.0  ;;  %v769_v13 = vmax.f32 %v767_v12, 0.0 }
 0x6d6   : > { %770 = vst [vmem:[%s342_s14] sm:$0xff] %v768_v4 }
 0x6d7   : > { %771 = vst [vmem:[%s342_s14 + $0x8] sm:$0xff] %v769_v13 }
 0x6d8   : > { %1278 = shalt.err (!%p1275_p9)
}
 0x6d9   : > { %961 = dma.vmem_to_hbm [thread:$0]  (%p1475_p13), %s787_s29, 256, %s789_s11, %s773_s28  }
 0x6da PF: > { %s800_s18 = sand.u32 1, %s1317_s21   ;;  %p1664_p10 = scmp.ge.s32.totalorder %s1329_s24, 2 }
 0x6db   : > { %s801_s20 = scalar_lea.sflag [#allocation5], %s800_s18 }
 0x6dc   : > { %p984_p11 = pnand %p1664_p10, %p1480_p5 }
 0x6de   : > { %p985_p0 = pneg %p984_p11 }
 0x6e0   : > { %1312 = dma.done.wait (%p985_p0), %s801_s20, 256  }
 0x6e1   : > { %1314 = vsyncadd (%p985_p0), %s801_s20, 4294967040  ;;  %p22_p2 = scmp.ge.s32.totalorder %s1455_s13, 4   ;;  %s1665_s21 = smov %s1321_s22 }
 0x6e2   : > { %s1666_s22 = smov %s1325_s23  ;;  %s1667_s23 = smov %s1467_s16 }
 0x6e3   : > { %s1668_s24 = smov %s1455_s13  ;;  %24 = sbr.rel (!%p22_p2) target bundleno = 8 (0x8), region = 109 }
 0x6e8   :  { %807 = vsyncpa [#allocation4], 1 }
 0x6e9   :  { %809 = vsyncpa [#allocation4 + $0x1], 1 }
 0x6ea   :  { %810 = vsyncpa [#allocation7], 1 }
 0x6eb   :  { %811 = vsyncpa [#allocation10], 1 }
 0x6ec   :  { %812 = vsyncpa [#allocation13], 1 }
 0x6ed   :  { %813 = vsyncpa [#allocation5], 1 }
 0x6ee   :  { %815 = vsyncpa [#allocation5 + $0x1], 1 }

</bundles_post_ra>
